<compile_context>
chip_gen: v7x
topology: tpu7x:2x2x1
jax: 0.10.0
libtpu: 0.0.40
codegen_flags: <defaults>
</compile_context>

<pallas_src>
from functools import partial

import jax
import jax.numpy as jnp
from jax.experimental import pallas as pl
from jax.experimental.pallas import tpu as pltpu

# ---- small config consistent with the module ----
B, S, H = 2, 8, 32          # batch, seq_len, hidden_size
VOCAB = 128                 # vocab_size
MAX_POS = 16                # max_position_embeddings (>= S)
TYPE_VOCAB = 2              # type_vocab_size
WEIGHT_BITS = 8
LN_EPS = 1e-12


# ---------- weight fake-quantization (hoisted OUT of the kernel) ----------
# TODO(synk): QuantizeEmbedding / SymQuantizer sources are not in the reference;
# modeled as symmetric per-tensor 8-bit fake-quant (max-abs scale -> round -> dequant).
def sym_quant_weight(w, bits=WEIGHT_BITS):
    n = 2.0 ** (bits - 1) - 1.0
    scale = jnp.maximum(jnp.max(jnp.abs(w)), 1e-8)
    return jnp.round(w * (n / scale)) * (scale / n)


# ---------- fused embeddings kernel (one grid step per batch element) ----------
def _bert_embeddings_kernel(ids_ref, tok_ref, word_ref, pos_ref, typ_ref,
                            gamma_ref, beta_ref, out_ref):
    ids = ids_ref[0]                                     # [1, S] int32
    tok = tok_ref[0]                                     # [1, S] int32

    # Gather-free embedding lookup: build the one-hot as [V, S] (iota over rows,
    # compare against the [1, S] id vector) and contract dim 0 of both operands on
    # the MXU.  This avoids any in-kernel transpose of the id vector and any
    # per-row scalar gather.
    v_iota = jax.lax.broadcasted_iota(jnp.int32, (VOCAB, S), 0)
    word_oh = (v_iota == ids).astype(jnp.float32)        # [V, S]
    words = jax.lax.dot_general(
        word_oh, word_ref[...], (((0,), (0,)), ((), ())),
        preferred_element_type=jnp.float32)              # [S, H]

    t_iota = jax.lax.broadcasted_iota(jnp.int32, (TYPE_VOCAB, S), 0)
    typ_oh = (t_iota == tok).astype(jnp.float32)         # [T, S]
    typs = jax.lax.dot_general(
        typ_oh, typ_ref[...], (((0,), (0,)), ((), ())),
        preferred_element_type=jnp.float32)              # [S, H]

    # position_ids = arange(S) for every batch row -> pos_ref already holds rows [0, S)
    x = words + pos_ref[...] + typs                      # [S, H]

    # LayerNorm over the hidden dim.
    # TODO(synk): dropout is treated as identity (eval mode).
    mean = jnp.mean(x, axis=-1, keepdims=True)
    var = jnp.mean(jnp.square(x - mean), axis=-1, keepdims=True)
    y = (x - mean) * jax.lax.rsqrt(var + LN_EPS)
    out_ref[0] = y * gamma_ref[...] + beta_ref[...]


def bert_embeddings_forward(params, input_ids, token_type_ids):
    # Hoisted weight fake-quant: constant per forward (cached in a real model),
    # so the cross-lane max-abs reduction never runs inside the kernel.
    word_q = sym_quant_weight(params["word_emb"])

    # ids reshaped to [B, 1, S] so the per-batch block (1, 1, S) keeps the last two
    # dims equal to the full array dims (satisfies the (8, 128) blocking rule).
    ids3 = input_ids.reshape(B, 1, S).astype(jnp.int32)
    tok3 = token_type_ids.reshape(B, 1, S).astype(jnp.int32)

    return pl.pallas_call(
        _bert_embeddings_kernel,
        out_shape=jax.ShapeDtypeStruct((B, S, H), jnp.float32),
        grid=(B,),
        in_specs=[
            pl.BlockSpec((1, 1, S), lambda b: (b, 0, 0)),      # input_ids (per batch)
            pl.BlockSpec((1, 1, S), lambda b: (b, 0, 0)),      # token_type_ids
            pl.BlockSpec((VOCAB, H), lambda b: (0, 0)),        # pre-quantized word table
            pl.BlockSpec((S, H), lambda b: (0, 0)),            # first S rows of pos table
            pl.BlockSpec((TYPE_VOCAB, H), lambda b: (0, 0)),   # token-type table
            pl.BlockSpec((1, H), lambda b: (0, 0)),            # LN gamma
            pl.BlockSpec((1, H), lambda b: (0, 0)),            # LN beta
        ],
        out_specs=pl.BlockSpec((1, S, H), lambda b: (b, 0, 0)),
        compiler_params=pltpu.CompilerParams(
            dimension_semantics=("parallel",)),
    )(ids3, tok3, word_q, params["pos_emb"], params["type_emb"],
      params["ln_g"], params["ln_b"])


# ---------- pure-JAX reference (for a correctness check) ----------
def _reference(params, input_ids, token_type_ids):
    word_q = sym_quant_weight(params["word_emb"])
    words = jnp.take(word_q, input_ids, axis=0)                        # [B, S, H]
    pos = params["pos_emb"][:S][None, :, :]                           # [1, S, H]
    typ = jnp.take(params["type_emb"], token_type_ids, axis=0)        # [B, S, H]
    x = words + pos + typ
    mean = jnp.mean(x, axis=-1, keepdims=True)
    var = jnp.mean(jnp.square(x - mean), axis=-1, keepdims=True)
    return (x - mean) * jax.lax.rsqrt(var + LN_EPS) * params["ln_g"] + params["ln_b"]


def init_params(key):
    ks = jax.random.split(key, 3)
    word = jax.random.normal(ks[0], (VOCAB, H), jnp.float32) * 0.02
    word = word.at[0].set(0.0)  # padding_idx=0 row is zero-initialized
    return {
        "word_emb": word,
        "pos_emb": jax.random.normal(ks[1], (MAX_POS, H), jnp.float32) * 0.02,
        "type_emb": jax.random.normal(ks[2], (TYPE_VOCAB, H), jnp.float32) * 0.02,
        "ln_g": jnp.ones((1, H), jnp.float32),
        "ln_b": jnp.zeros((1, H), jnp.float32),
    }


if __name__ == "__main__":
    key = jax.random.PRNGKey(0)
    pkey, ikey = jax.random.split(key)
    params = init_params(pkey)

    input_ids = jax.random.randint(ikey, (B, S), 0, VOCAB, dtype=jnp.int32)
    input_ids = input_ids.at[0, S - 2:].set(0)  # a couple of padding tokens
    token_type_ids = jnp.concatenate(
        [jnp.zeros((B, S // 2), jnp.int32), jnp.ones((B, S // 2), jnp.int32)], axis=1)

    fwd = jax.jit(partial(bert_embeddings_forward, params))
    out = fwd(input_ids, token_type_ids)
    jax.block_until_ready(out)
    assert out.shape == (B, S, H)

    ref = _reference(params, input_ids, token_type_ids)
    max_err = float(jnp.max(jnp.abs(out - ref)))
    assert jnp.allclose(out, ref, atol=1e-2, rtol=1e-2), max_err

    print("KERNEL_OK")
</pallas_src>

<mosaic_0001>
module attributes {stable_mosaic.version = 11 : i64} {
  func.func @_bert_embeddings_kernel(%arg0: i32, %arg1: memref<1x1x8xi32, #tpu.memory_space<vmem>>, %arg2: memref<1x1x8xi32, #tpu.memory_space<vmem>>, %arg3: memref<128x32xf32, #tpu.memory_space<vmem>>, %arg4: memref<8x32xf32, #tpu.memory_space<vmem>>, %arg5: memref<2x32xf32, #tpu.memory_space<vmem>>, %arg6: memref<1x32xf32, #tpu.memory_space<vmem>>, %arg7: memref<1x32xf32, #tpu.memory_space<vmem>>, %arg8: memref<1x8x32xf32, #tpu.memory_space<vmem>>) attributes {dimension_semantics = [#tpu.dimension_semantics<parallel>], iteration_bounds = array<i64: 2>, scalar_prefetch = 0 : i64, scratch_operands = 0 : i64, tpu.core_type = #tpu.core_type<tc>, window_params = [{transform_indices = @transform_0, window_bounds = array<i64: 1, 1, 8>}, {transform_indices = @transform_1, window_bounds = array<i64: 1, 1, 8>}, {pipeline_mode = #tpu.pipeline_mode<synchronous>, transform_indices = @transform_2, window_bounds = array<i64: 128, 32>}, {transform_indices = @transform_3, window_bounds = array<i64: 8, 32>}, {pipeline_mode = #tpu.pipeline_mode<synchronous>, transform_indices = @transform_4, window_bounds = array<i64: 2, 32>}, {pipeline_mode = #tpu.pipeline_mode<synchronous>, transform_indices = @transform_5, window_bounds = array<i64: 1, 32>}, {pipeline_mode = #tpu.pipeline_mode<synchronous>, transform_indices = @transform_6, window_bounds = array<i64: 1, 32>}, {transform_indices = @transform_7, window_bounds = array<i64: 1, 8, 32>}]} {
    %c0 = arith.constant 0 : index
    %c0_0 = arith.constant 0 : index
    %c0_1 = arith.constant 0 : index
    %0 = vector.load %arg1[%c0, %c0_0, %c0_1] : memref<1x1x8xi32, #tpu.memory_space<vmem>>, vector<1x1x8xi32>
    %1 = vector.shape_cast %0 : vector<1x1x8xi32> to vector<1x8xi32>
    %c0_2 = arith.constant 0 : index
    %c0_3 = arith.constant 0 : index
    %c0_4 = arith.constant 0 : index
    %2 = vector.load %arg2[%c0_2, %c0_3, %c0_4] : memref<1x1x8xi32, #tpu.memory_space<vmem>>, vector<1x1x8xi32>
    %3 = vector.shape_cast %2 : vector<1x1x8xi32> to vector<1x8xi32>
    %4 = tpu.iota {dimensions = array<i32: 0>} : vector<128x8xi32>
    %5 = vector.broadcast %1 : vector<1x8xi32> to vector<128x8xi32>
    %6 = arith.cmpi eq, %4, %5 : vector<128x8xi32>
    %7 = arith.extui %6 : vector<128x8xi1> to vector<128x8xi32>
    %8 = arith.sitofp %7 : vector<128x8xi32> to vector<128x8xf32>
    %c0_5 = arith.constant 0 : index
    %c0_6 = arith.constant 0 : index
    %9 = vector.load %arg3[%c0_5, %c0_6] : memref<128x32xf32, #tpu.memory_space<vmem>>, vector<128x32xf32>
    %cst = arith.constant dense<0.000000e+00> : vector<8x32xf32>
    %10 = tpu.matmul %8, %9, %cst {dimension_numbers = #tpu.dot_dimension_numbers<[0], [0], [1], [1], [0, 1, 1, 1], [], []>} : vector<128x8xf32>, vector<128x32xf32>, vector<8x32xf32> -> vector<8x32xf32>
    %11 = tpu.iota {dimensions = array<i32: 0>} : vector<2x8xi32>
    %12 = vector.broadcast %3 : vector<1x8xi32> to vector<2x8xi32>
    %13 = arith.cmpi eq, %11, %12 : vector<2x8xi32>
    %14 = arith.extui %13 : vector<2x8xi1> to vector<2x8xi32>
    %15 = arith.sitofp %14 : vector<2x8xi32> to vector<2x8xf32>
    %c0_7 = arith.constant 0 : index
    %c0_8 = arith.constant 0 : index
    %16 = vector.load %arg5[%c0_7, %c0_8] : memref<2x32xf32, #tpu.memory_space<vmem>>, vector<2x32xf32>
    %cst_9 = arith.constant dense<0.000000e+00> : vector<8x32xf32>
    %17 = tpu.matmul %15, %16, %cst_9 {dimension_numbers = #tpu.dot_dimension_numbers<[0], [0], [1], [1], [0, 1, 1, 1], [], []>} : vector<2x8xf32>, vector<2x32xf32>, vector<8x32xf32> -> vector<8x32xf32>
    %c0_10 = arith.constant 0 : index
    %c0_11 = arith.constant 0 : index
    %18 = vector.load %arg4[%c0_10, %c0_11] : memref<8x32xf32, #tpu.memory_space<vmem>>, vector<8x32xf32>
    %19 = arith.addf %10, %18 : vector<8x32xf32>
    %20 = arith.addf %19, %17 : vector<8x32xf32>
    %cst_12 = arith.constant dense<0.000000e+00> : vector<8xf32>
    %21 = vector.multi_reduction <add>, %20, %cst_12 [1] : vector<8x32xf32> to vector<8xf32>
    %22 = vector.shape_cast %21 : vector<8xf32> to vector<8x1xf32>
    %cst_13 = arith.constant 3.200000e+01 : f32
    %23 = vector.broadcast %cst_13 : f32 to vector<8x1xf32>
    %24 = arith.divf %22, %23 : vector<8x1xf32>
    %25 = vector.broadcast %24 : vector<8x1xf32> to vector<8x32xf32>
    %26 = arith.subf %20, %25 : vector<8x32xf32>
    %27 = arith.mulf %26, %26 : vector<8x32xf32>
    %cst_14 = arith.constant dense<0.000000e+00> : vector<8xf32>
    %28 = vector.multi_reduction <add>, %27, %cst_14 [1] : vector<8x32xf32> to vector<8xf32>
    %29 = vector.shape_cast %28 : vector<8xf32> to vector<8x1xf32>
    %cst_15 = arith.constant 3.200000e+01 : f32
    %30 = vector.broadcast %cst_15 : f32 to vector<8x1xf32>
    %31 = arith.divf %29, %30 : vector<8x1xf32>
    %32 = vector.broadcast %24 : vector<8x1xf32> to vector<8x32xf32>
    %33 = arith.subf %20, %32 : vector<8x32xf32>
    %cst_16 = arith.constant 9.99999996E-13 : f32
    %34 = vector.broadcast %cst_16 : f32 to vector<8x1xf32>
    %35 = arith.addf %31, %34 : vector<8x1xf32>
    %36 = math.rsqrt %35 : vector<8x1xf32>
    %37 = vector.broadcast %36 : vector<8x1xf32> to vector<8x32xf32>
    %38 = arith.mulf %33, %37 : vector<8x32xf32>
    %c0_17 = arith.constant 0 : index
    %c0_18 = arith.constant 0 : index
    %39 = vector.load %arg6[%c0_17, %c0_18] : memref<1x32xf32, #tpu.memory_space<vmem>>, vector<1x32xf32>
    %40 = vector.broadcast %39 : vector<1x32xf32> to vector<8x32xf32>
    %41 = arith.mulf %38, %40 : vector<8x32xf32>
    %c0_19 = arith.constant 0 : index
    %c0_20 = arith.constant 0 : index
    %42 = vector.load %arg7[%c0_19, %c0_20] : memref<1x32xf32, #tpu.memory_space<vmem>>, vector<1x32xf32>
    %43 = vector.broadcast %42 : vector<1x32xf32> to vector<8x32xf32>
    %44 = arith.addf %41, %43 : vector<8x32xf32>
    %c0_21 = arith.constant 0 : index
    %c0_22 = arith.constant 0 : index
    %c0_23 = arith.constant 0 : index
    %45 = vector.load %arg8[%c0_21, %c0_22, %c0_23] : memref<1x8x32xf32, #tpu.memory_space<vmem>>, vector<1x8x32xf32>
    %46 = vector.shape_cast %45 : vector<1x8x32xf32> to vector<8x32xf32>
    %47 = vector.shape_cast %44 : vector<8x32xf32> to vector<1x8x32xf32>
    tpu.vector_store %arg8[%c0_21, %c0_22, %c0_23], %47 {strides = array<i32>} : memref<1x8x32xf32, #tpu.memory_space<vmem>>, vector<1x8x32xf32>,
    return
  }
  func.func @transform_0(%arg0: i32) -> (i32, i32, i32) {
    %c0_i32 = arith.constant 0 : i32
    %c0_i32_0 = arith.constant 0 : i32
    %c0_i32_1 = arith.constant 0 : i32
    return %arg0, %c0_i32, %c0_i32_0 : i32, i32, i32
  }
  func.func @transform_1(%arg0: i32) -> (i32, i32, i32) {
    %c0_i32 = arith.constant 0 : i32
    %c0_i32_0 = arith.constant 0 : i32
    %c0_i32_1 = arith.constant 0 : i32
    return %arg0, %c0_i32, %c0_i32_0 : i32, i32, i32
  }
  func.func @transform_2(%arg0: i32) -> (i32, i32) {
    %c0_i32 = arith.constant 0 : i32
    %c0_i32_0 = arith.constant 0 : i32
    %c0_i32_1 = arith.constant 0 : i32
    return %c0_i32, %c0_i32_0 : i32, i32
  }
  func.func @transform_3(%arg0: i32) -> (i32, i32) {
    %c0_i32 = arith.constant 0 : i32
    %c0_i32_0 = arith.constant 0 : i32
    %c0_i32_1 = arith.constant 0 : i32
    return %c0_i32, %c0_i32_0 : i32, i32
  }
  func.func @transform_4(%arg0: i32) -> (i32, i32) {
    %c0_i32 = arith.constant 0 : i32
    %c0_i32_0 = arith.constant 0 : i32
    %c0_i32_1 = arith.constant 0 : i32
    return %c0_i32, %c0_i32_0 : i32, i32
  }
  func.func @transform_5(%arg0: i32) -> (i32, i32) {
    %c0_i32 = arith.constant 0 : i32
    %c0_i32_0 = arith.constant 0 : i32
    %c0_i32_1 = arith.constant 0 : i32
    return %c0_i32, %c0_i32_0 : i32, i32
  }
  func.func @transform_6(%arg0: i32) -> (i32, i32) {
    %c0_i32 = arith.constant 0 : i32
    %c0_i32_0 = arith.constant 0 : i32
    %c0_i32_1 = arith.constant 0 : i32
    return %c0_i32, %c0_i32_0 : i32, i32
  }
  func.func @transform_7(%arg0: i32) -> (i32, i32, i32) {
    %c0_i32 = arith.constant 0 : i32
    %c0_i32_0 = arith.constant 0 : i32
    %c0_i32_1 = arith.constant 0 : i32
    return %arg0, %c0_i32, %c0_i32_0 : i32, i32, i32
  }
}

</mosaic_0001>

<bundles_post_ra>
// kernel: bert_embeddings_forward.1
= control target key start
LH: loop header
LB: loop body
LE: loop exit
PB: predicated region body
PF: predicated region fallthrough
CT: control target
= control target key end

     0   :  { %12 = vsyncpa [#allocation3], 0  ;;  %s1269_s0 = inlined_call_operand.vmem [shape: s32[2,1,8], index: 0, kind: input, shape index: {}]   ;;  %s1270_s1 = inlined_call_operand.vmem [shape: s32[2,1,8], index: 1, kind: input, shape index: {}]   ;;  %s1271_s2 = inlined_call_operand.hbm [shape: f32[128,32], index: 2, kind: input, shape index: {}]   ;;  %s1272_s3 = inlined_call_operand.vmem [shape: f32[16,32], index: 3, kind: input, shape index: {}]   ;;  %s1273_s4 = inlined_call_operand.vmem [shape: f32[2,32], index: 4, kind: input, shape index: {}]   ;;  %s1274_s5 = inlined_call_operand.vmem [shape: f32[1,32], index: 5, kind: input, shape index: {}]   ;;  %s1275_s6 = inlined_call_operand.vmem [shape: f32[1,32], index: 6, kind: input, shape index: {}]   ;;  %s1276_s7 = inlined_call_operand.hbm [shape: f32[2,8,32], index: 7, kind: output, shape index: {}]  }
   0x1   :  { %13 = vsyncpa [#allocation4], 0 }
   0x2   :  { %15 = vsyncpa [#allocation4 + $0x1], 0  ;;  %s1051_s24 = smov 0   ;;  %s1053_s25 = smov 0  }
   0x3   :  { %s1055_s26 = smov 0   ;;  %s1057_s27 = smov 0  }
   0x4 LB: > { %s1072_s28 = sadd.s32 4294967295, %s1002_s27   ;;  %s732_s29 = sadd.s32 4294967294, %s1002_s27   ;;  %s1002_s27 = sphi %s1057_s27, %s1292_s27   ;;  %s998_s26 = sphi %s1055_s26, %s1291_s26   ;;  %s994_s25 = sphi %s1053_s25, %s1290_s25   ;;  %s990_s24 = sphi %s1051_s24, %s1289_s24  }
   0x5   : > { %s1076_s30 = sadd.s32 1, %s1002_s27   ;;  %s185_s8 = sadd.s32 1, %s998_s26 }
   0x6   : > { %s182_s9 = ssub.s32 %s1002_s27, %s1076_s30  ;;  %p195_p0 = scmp.ne.s32.totalorder %s998_s26, %s994_s25 }
   0x7   : > { %p183_p1 = scmp.eq.s32.totalorder %s182_s9, 0  ;;  %p196_p2 = scmp.eq.s32.totalorder %s1072_s28, 1 }
   0x8   : > { %p201_p3 = scmp.ne.s32.totalorder %s994_s25, %s990_s24  ;;  %p202_p4 = scmp.eq.s32.totalorder %s732_s29, 1 }
   0x9   : > { %s1087_s10 = scalar_select %p183_p1, %s998_s26, %s185_s8  }
   0xa   : > { %p1089_p5 = por %p196_p2, %p195_p0  ;;  %p1093_p6 = por %p202_p4, %p201_p3 }
   0xb   : > { %p733_p7 = scmp.ge.s32.totalorder %s1002_s27, 1  ;;  %p209_p8 = scmp.lt.s32.totalorder %s1002_s27, 3 }
   0xc   : > { %s1280_s11 = scalar_select %p1089_p5, 1, 0 }
   0xd   : > { %s1281_s12 = scalar_select %p1093_p6, 1, 0 }
   0xe   : > { %p1277_p9 = scmp.eq.s32.totalorder %s1072_s28, 0  ;;  %p1100_p10 = pnand %p733_p7, %p209_p8 }
   0xf   : > { %s1004_s14 = smov [#allocation2]   ;;  %s908_s19 = scalar_lea.hbm %s1271_s2, 2048 }
  0x10   : > { %s1282_s13 = scalar_select %p1100_p10, 1, 0 }
  0x11   : > { %s221_s15 = sshll.u32 %s1004_s14, 4  ;;  %p857_p11 = pneg %p1100_p10  ;;  %s222_s15 = int_to_ptr.vmem [resolvable:$true] %s221_s15 }
  0x12   : > { %p909_p13 = scmp.ne.s32.totalorder %s1271_s2, %s908_s19  ;;  %p915_p3 = scmp.lt.u32.totalorder %s908_s19, %s1271_s2 }
  0x13   : > { %p1108_p12 = pnand %p1277_p9, %p857_p11 }
  0x15   : > { %p910_p0 = pneg %p1108_p12 }
  0x17   : > { %p911_p1 = pnand %p910_p0, %p909_p13 }
  0x19   : > { %p912_p2 = pneg %p911_p1 }
  0x1b   : > { %p917_p4 = pnand %p915_p3, %p912_p2 }
  0x1d   : > { %920 = shalt.err (!%p917_p4)
}
  0x1e   : > { %s921_s29 = scalar_lea.vmem %s222_s15, 2048  ;;  %p929_p9 = scmp.lt.s32.totalorder %s222_s15, %s222_s15 }
  0x1f   : > { %p922_p7 = scmp.ne.s32.totalorder %s222_s15, %s921_s29  ;;  %p930_p6 = scmp.lt.s32.totalorder %s921_s29, %s921_s29 }
  0x21   : > { %p924_p8 = pnand %p922_p7, %p910_p0  ;;  %p931_p5 = por %p930_p6, %p929_p9 }
  0x23   : > { %p925_p11 = pneg %p924_p8 }
  0x25   : > { %p932_p10 = pnand %p931_p5, %p925_p11 }
  0x27   : > { %935 = shalt.err (!%p932_p10)
}
  0x28   : > { %s1005_s8 = smov 128   ;;  %s1006_s9 = smov 8  }
  0x29   : > { %860 = dma.hbm_to_vmem [thread:$0]  (!%p1108_p12), %s1271_s2, 2048, %s222_s15, [#allocation3], %s1005_s8, %s1005_s8, %s1006_s9  }
  0x2a   : > { %p1284_p13 = scmp.ne.s32.totalorder %s1282_s13, 0 }
  0x2b   : > { %p1285_p1 = scmp.eq.s32.totalorder (!%p1284_p13), %s1072_s28, 0 }
  0x2c   : > { %261 = sbr.rel (%p1284_p13) target bundleno = 734 (0x2de), region = 48 }
  0x33   : > { %981 = dma.done.wait (%p1285_p1), [#allocation3], 2048   ;;  %p1286_p0 = pmov %p1285_p1 }
  0x34   : > { %p294_p5 = scmp.lt.s32.totalorder %s1072_s28, 1  ;;  %v302_v0 = vlaneseq  ;;  %v1007_v1 = vmov 0.0|0.0   ;;  %v1008_v2 = vmov 0.0   ;;  %vm1009_vm0 = vmmov 0   ;;  %v371_v10 = vld [vmem:[#allocation2] sm:$0xff]  ;;  %v372_v11 = vld [vmem:[#allocation2 + $0x8] sm:$0xff] }
  0x35   : > { %983 = vsyncadd (%p1286_p0), [#allocation3], 4294965248  ;;  %825 = vmatprep.subr.bf16.mxu0 %v1007_v1  ;;  %785 = vmatprep.subr.mxu1 %v1008_v2  ;;  %vm431_vm4 = vcmask 1041408   ;;  %v394_v12 = vld [vmem:[%s1273_s4] sm:$0x3]  ;;  %v373_v14 = vld [vmem:[#allocation2 + $0x10] sm:$0xff]  ;;  %v826_v17 = vpack.c.bf16 %v372_v11, %v371_v10 }
  0x36   : > { %s295_s15 = scalar_select %p294_p5, %s1072_s28, 1  ;;  %787 = vmatprep.mubr.msk.f32.mxu1 %vm1009_vm0, %v1008_v2  ;;  %822 = vmatprep.mubr.msk.f32.mxu0 %vm1009_vm0, %v1008_v2  ;;  %v1146_v3 = vshrl.u32 %v302_v0, 7  ;;  %v374_v15 = vld [vmem:[#allocation2 + $0x18] sm:$0xff]  ;;  %v375_v20 = vld [vmem:[#allocation2 + $0x20] sm:$0xff]  ;;  %v376_v21 = vld [vmem:[#allocation2 + $0x28] sm:$0xff] }
  0x37   : > { %786 = vmatpush3.msk.msra.mxu1 %vm431_vm4, %v394_v12  ;;  %827 = vmatpush3.bf16.msra.mxu0 %v826_v17  ;;  %v829_v18 = vpack.c.bf16 %v374_v15, %v373_v14  ;;  %v832_v23 = vpack.c.bf16 %v376_v21, %v375_v20  ;;  %v377_v25 = vld [vmem:[#allocation2 + $0x30] sm:$0xff]  ;;  %v378_v26 = vld [vmem:[#allocation2 + $0x38] sm:$0xff]  ;;  %v379_v30 = vld [vmem:[#allocation2 + $0x40] sm:$0xff]  ;;  %vm609_vm4 = vcmask 261120   ;;  %s291_s9 = sand.u32 1, %s994_s25   ;;  %p1287_p9 = scmp.ne.s32.totalorder %s1280_s11, 0 }
  0x38   : > { %s296_s18 = scalar_lea.vmem %s1269_s0, %s295_s15  ;;  %s299_s21 = scalar_lea.vmem %s1270_s1, %s295_s15  ;;  %v304_v6 = vadd.s32 8, %v1146_v3  ;;  %v305_v9 = vadd.s32 16, %v1146_v3  ;;  %v306_v16 = vadd.s32 24, %v1146_v3  ;;  %828 = vmatprep.subr.bf16.mxu0 %v1007_v1  ;;  %v307_v22 = vadd.s32 32, %v1146_v3  ;;  %v380_v31 = vld [vmem:[#allocation2 + $0x48] sm:$0xff]  ;;  %v381_v35 = vld [vmem:[#allocation2 + $0x50] sm:$0xff] }
  0x39   : > { %v756_v4 = vld [vmem:[%s299_s21] ss:$0 sm:$0xff]  ;;  %v308_v27 = vadd.s32 40, %v1146_v3  ;;  %v835_v28 = vpack.c.bf16 %v378_v26, %v377_v25  ;;  %v309_v32 = vadd.s32 48, %v1146_v3  ;;  %v838_v33 = vpack.c.bf16 %v380_v31, %v379_v30  ;;  %v382_v36 = vld [vmem:[#allocation2 + $0x58] sm:$0xff]  ;;  %v384_v41 = vld [vmem:[#allocation2 + $0x68] sm:$0xff] }
  0x3a   : > { %v1148_v5 = vld [vmem:[%s296_s18] ss:$0 sm:$0xff]  ;;  %vm391_vm1 = vcmp.eq.s32.totalorder %v1146_v3, %v756_v4  ;;  %v310_v37 = vadd.s32 56, %v1146_v3  ;;  %v841_v38 = vpack.c.bf16 %v382_v36, %v381_v35  ;;  %v311_v42 = vadd.s32 64, %v1146_v3  ;;  %v385_v45 = vld [vmem:[#allocation2 + $0x70] sm:$0xff]  ;;  %v386_v46 = vld [vmem:[#allocation2 + $0x78] sm:$0xff] }
  0x3b   : > { %vm323_vm2 = vcmp.eq.s32.totalorder %v1146_v3, %v1148_v5  ;;  %v757_v7 = vsel %vm391_vm1, 1.0, %v1008_v2  ;;  %vm324_vm3 = vcmp.eq.s32.totalorder %v304_v6, %v1148_v5  ;;  %vm325_vm5 = vcmp.eq.s32.totalorder %v305_v9, %v1148_v5  ;;  %830 = vmatpush3.bf16.msra.mxu0 %v829_v18  ;;  %v383_v40 = vld [vmem:[#allocation2 + $0x60] sm:$0xff]  ;;  %s738_s14 = sshll.u32 %s291_s9, 3  ;;  %s763_s18 = sshll.u32 %s1072_s28, 7 }
  0x3c   : > { %395 = vxpose.xlu0.b32.start.end [1/1] (short) (narrow) %v757_v7, 8  ;;  %v740_v8 = vsel %vm323_vm2, 1.0, %v1008_v2  ;;  %v741_v13 = vsel %vm324_vm3, 1.0, %v1008_v2  ;;  %v742_v19 = vsel %vm325_vm5, 1.0, %v1008_v2  ;;  %vm326_vm6 = vcmp.eq.s32.totalorder %v306_v16, %v1148_v5  ;;  %831 = vmatprep.subr.bf16.mxu0 %v1007_v1  ;;  %v505_v4 = vld [vmem:[%s1272_s3] sm:$0xff]  ;;  %s293_s19 = scalar_lea.vmem [#allocation5], %s738_s14  ;;  %s1226_s23 = scalar_lea.hbm %s1276_s7, %s763_s18 }
  0x3d   : > { %v743_v24 = vsel %vm326_vm6, 1.0, %v1008_v2  ;;  %vm327_vm7 = vcmp.eq.s32.totalorder %v307_v22, %v1148_v5  ;;  %vm328_vm8 = vcmp.eq.s32.totalorder %v308_v27, %v1148_v5  ;;  %vm329_vm9 = vcmp.eq.s32.totalorder %v309_v32, %v1148_v5  ;;  %v760_v18 = vld [vmem:[%s1274_s5] ss:$0 sm:$0xff]  ;;  %s655_s20 = sshll.u32 %s293_s19, 4  ;;  %s642_s29 = scalar_lea.sflag [#allocation4], %s291_s9  ;;  %s1228_s20 = int_to_ptr.vmem [resolvable:$true] %s655_s20 }
  0x3e   : > { %v744_v29 = vsel %vm327_vm7, 1.0, %v1008_v2  ;;  %v745_v34 = vsel %vm328_vm8, 1.0, %v1008_v2  ;;  %v746_v39 = vsel %vm329_vm9, 1.0, %v1008_v2  ;;  %vm330_vm10 = vcmp.eq.s32.totalorder %v310_v37, %v1148_v5  ;;  %v761_v20 = vld [vmem:[%s1275_s6] ss:$0 sm:$0xff]  ;;  %s936_s8 = scalar_lea.vmem %s1228_s20, 128 }
  0x3f   : > { %833 = vmatpush3.bf16.msra.mxu0 %v832_v23  ;;  %v844_v43 = vpack.c.bf16 %v384_v41, %v383_v40  ;;  %v747_v44 = vsel %vm330_vm10, 1.0, %v1008_v2  ;;  %vm331_vm11 = vcmp.eq.s32.totalorder %v311_v42, %v1148_v5  ;;  %v312_v47 = vadd.s32 72, %v1146_v3  ;;  %p937_p6 = scmp.ne.s32.totalorder %s1228_s20, %s936_s8  ;;  %s1010_s28 = smov [#allocation5]  }
  0x40   : > { %506 = vxpose.xlu0.b32.start [1/16] (narrow) %v740_v8, 8  ;;  %834 = vmatprep.subr.bf16.mxu0 %v1007_v1  ;;  %v847_v48 = vpack.c.bf16 %v386_v46, %v385_v45  ;;  %v748_v49 = vsel %vm331_vm11, 1.0, %v1008_v2  ;;  %v313_v50 = vadd.s32 80, %v1146_v3  ;;  %v314_v52 = vadd.s32 88, %v1146_v3  ;;  %s940_s14 = sshll.u32 %s1010_s28, 4  ;;  %s941_s14 = int_to_ptr.vmem [resolvable:$false] %s940_s14 }
  0x41   : > { %vm332_vm12 = vcmp.eq.s32.totalorder %v312_v47, %v1148_v5  ;;  %v315_v54 = vadd.s32 96, %v1146_v3  ;;  %v316_v56 = vadd.s32 104, %v1146_v3  ;;  %v317_v58 = vadd.s32 112, %v1146_v3  ;;  %p938_p10 = pnand %p937_p6, %p1287_p9  ;;  %s942_s17 = scalar_lea.vmem %s941_s14, 256 }
  0x42   : > { %v749_v51 = vsel %vm332_vm12, 1.0, %v1008_v2  ;;  %vm333_vm13 = vcmp.eq.s32.totalorder %v313_v50, %v1148_v5  ;;  %vm334_vm14 = vcmp.eq.s32.totalorder %v314_v52, %v1148_v5  ;;  %v318_v60 = vadd.s32 120, %v1146_v3  ;;  %p943_p2 = scmp.lt.s32.totalorder %s1228_s20, %s941_s14  ;;  %p944_p3 = scmp.lt.s32.totalorder %s942_s17, %s936_s8 }
  0x43   : > { %836 = vmatpush3.bf16.msra.mxu0 %v835_v28  ;;  %v750_v53 = vsel %vm333_vm13, 1.0, %v1008_v2  ;;  %v751_v55 = vsel %vm334_vm14, 1.0, %v1008_v2  ;;  %vm335_vm15 = vcmp.eq.s32.totalorder %v315_v54, %v1148_v5  ;;  %vm336_vm0 = vcmp.eq.s32.totalorder %v316_v56, %v1148_v5  ;;  %p939_p12 = pneg %p938_p10 }
  0x44   : > { %507 = vxpose.xlu0.b32.cont [2/16] (narrow) %v741_v13, 8  ;;  %837 = vmatprep.subr.bf16.mxu0 %v1007_v1  ;;  %v752_v57 = vsel %vm335_vm15, 1.0, %v1008_v2  ;;  %v753_v59 = vsel %vm336_vm0, 1.0, %v1008_v2  ;;  %vm337_vm1 = vcmp.eq.s32.totalorder %v317_v58, %v1148_v5  ;;  %vm338_vm2 = vcmp.eq.s32.totalorder %v318_v60, %v1148_v5  ;;  %p945_p4 = por %p944_p3, %p943_p2 }
  0x45   : > { %v754_v61 = vsel %vm337_vm1, 1.0, %v1008_v2  ;;  %v755_v62 = vsel %vm338_vm2, 1.0, %v1008_v2  ;;  %vm427_vm3 = vcmask 15360  }
  0x46   : > { %p946_p7 = pnand %p945_p4, %p939_p12 }
  0x47   : > { %839 = vmatpush3.bf16.msra.mxu0 %v838_v33 }
  0x48   : > { %508 = vxpose.xlu0.b32.cont [3/16] (narrow) %v742_v19, 8  ;;  %840 = vmatprep.subr.bf16.mxu0 %v1007_v1 }
  0x4b   : > { %842 = vmatpush3.bf16.msra.mxu0 %v841_v38 }
  0x4c   : > { %509 = vxpose.xlu0.b32.cont [4/16] (narrow) %v743_v24, 8  ;;  %843 = vmatprep.subr.bf16.mxu0 %v1007_v1 }
  0x4f   : > { %845 = vmatpush3.bf16.msra.mxu0 %v844_v43 }
  0x50   : > { %510 = vxpose.xlu0.b32.cont [5/16] (narrow) %v744_v29, 8  ;;  %846 = vmatprep.subr.bf16.mxu0 %v1007_v1 }
  0x53   : > { %848 = vmatpush3.bf16.msra.mxu0 %v847_v48 }
  0x54   : > { %511 = vxpose.xlu0.b32.cont [6/16] (narrow) %v745_v34, 8 }
  0x58   : > { %512 = vxpose.xlu0.b32.cont [7/16] (narrow) %v746_v39, 8 }
  0x5c   : > { %513 = vxpose.xlu0.b32.cont [8/16] (narrow) %v747_v44, 8 }
  0x60   : > { %514 = vxpose.xlu0.b32.cont [9/16] (narrow) %v748_v49, 8 }
  0x64   : > { %515 = vxpose.xlu0.b32.cont [10/16] (narrow) %v749_v51, 8 }
  0x68   : > { %516 = vxpose.xlu0.b32.cont [11/16] (narrow) %v750_v53, 8 }
  0x6c   : > { %517 = vxpose.xlu0.b32.cont [12/16] (narrow) %v751_v55, 8 }
  0x70   : > { %518 = vxpose.xlu0.b32.cont [13/16] (narrow) %v752_v57, 8 }
  0x74   : > { %519 = vxpose.xlu0.b32.cont [14/16] (narrow) %v753_v59, 8 }
  0x78   : > { %520 = vxpose.xlu0.b32.cont [15/16] (narrow) %v754_v61, 8 }
  0x7c   : > { %521 = vxpose.xlu0.b32.end [16/16] (narrow) %v755_v62, 8 }
  0xbc   : > { %v411_v63 = vpop.trf.xlu0 }
  0xbd   : > { %788 = vmatmul.mubr.msk.f32.vlgmr.msra.gmra.mrb[0].mxu1 %vm427_vm3, %v411_v63 }
  0xc0   : > { %v522_v0 = vpop.trf.xlu0 }
  0xc1   : > { %823 = vmatmul.mubr.f32.vlgmr.msra.gmra.mrb[0].mxu0 %v522_v0 }
 0x190   : > { %v501_v1 = vpop.f32.mrb[0].mxu1 }
 0x191   : > { %v789_v3 = vpop.f32.mrb[1].mxu1  ;;  %v849_v6 = vadd.f32 %v505_v4, %v501_v1 }
 0x194   : > { %v604_v7 = vpop.f32.mrb[0].mxu0 }
 0x195   : > { %v850_v5 = vadd.f32 %v849_v6, %v604_v7  ;;  %v824_v8 = vpop.f32.mrb[1].mxu0 }
 0x197   : > { %v610_v2 = vsel %vm609_vm4, %v850_v5, 0.0 }
 0x198   : > { %611 = vadd.xlane.f32.xlu1 %v610_v2 }
 0x225   : > { %v612_v9 = vpop.xlane.xlu1 %611 }
 0x226   : > { %v614_v10 = vmul.f32 0.03125, %v612_v9 }
 0x228   : > { %v615_v11 = vsub.f32 %v850_v5, %v614_v10 }
 0x22a   : > { %v616_v12 = vmul.f32 %v615_v11, %v615_v11 }
 0x22c   : > { %v617_v13 = vsel %vm609_vm4, %v616_v12, 0.0 }
 0x22d   : > { %618 = vadd.xlane.f32.xlu1 %v617_v13 }
 0x2ba   : > { %v619_v14 = vpop.xlane.xlu1 %618 }
 0x2bb   : > { %v620_v15 = vmul.f32 0.03125, %v619_v14 }
 0x2bd   : > { %v621_v16 = vadd.f32 1e-12, %v620_v15 }
 0x2bf   : > { %906 = vrsqrt.f32 %v621_v16 }
 0x2c9   : > { %v907_v17 = vpop.eup %906 }
 0x2ca   : > { %v623_v19 = vmul.f32 %v907_v17, %v615_v11 }
 0x2cc   : > { %v631_v21 = vmul.f32 %v760_v18, %v623_v19 }
 0x2ce   : > { %v639_v22 = vadd.f32 %v761_v20, %v631_v21 }
 0x2d0   : > { %640 = vst.msk [vmem:[%s293_s19] sm:$0xff] %vm609_vm4, %v639_v22 }
 0x2d1   : > { %949 = shalt.err (!%p946_p7)
}
 0x2d2   : > { %s950_s9 = scalar_lea.hbm %s1226_s23, 128  ;;  %s954_s16 = scalar_lea.hbm %s1276_s7, 256 }
 0x2d3   : > { %p951_p8 = scmp.ne.s32.totalorder %s1226_s23, %s950_s9  ;;  %p955_p1 = scmp.lt.u32.totalorder %s1226_s23, %s1276_s7 }
 0x2d4   : > { %p956_p0 = scmp.lt.u32.totalorder %s954_s16, %s950_s9  ;;  %p958_p6 = scmp.lt.u32.totalorder %s950_s9, %s1226_s23 }
 0x2d5   : > { %p952_p11 = pnand %p951_p8, %p1287_p9 }
 0x2d6   : > { %p957_p5 = por %p956_p0, %p955_p1 }
 0x2d7   : > { %p953_p13 = pneg %p952_p11 }
 0x2d8   : > { %p959_p10 = por %p958_p6, %p957_p5 }
 0x2da   : > { %p960_p12 = pnand %p959_p10, %p953_p13 }
 0x2dc   : > { %963 = shalt.err (!%p960_p12)
}
 0x2dd   : > { %855 = dma.vmem_to_hbm [thread:$0]  (%p1287_p9), %s1228_s20, 128, %s1226_s23, %s642_s29  }
 0x2de PF: > { %p867_p2 = scmp.ge.s32.totalorder %s1002_s27, 2  ;;  %s667_s21 = sand.u32 1, %s990_s24  }
 0x2df   : > { %p1288_p3 = scmp.ne.s32.totalorder %s1281_s12, 0  ;;  %s668_s22 = scalar_lea.sflag [#allocation4], %s667_s21 }
 0x2e1   : > { %p862_p4 = pnand %p867_p2, %p1288_p3 }
 0x2e3   : > { %985 = dma.done.wait (!%p862_p4), %s668_s22, 128  }
 0x2e4   : > { %987 = vsyncadd (!%p862_p4), %s668_s22, 4294967168  ;;  %p18_p7 = scmp.ge.s32.totalorder %s1076_s30, 4   ;;  %s1289_s24 = smov %s994_s25 }
 0x2e5   : > { %s1290_s25 = smov %s998_s26  ;;  %s1291_s26 = smov %s1087_s10 }
 0x2e6   : > { %s1292_s27 = smov %s1076_s30  ;;  %20 = sbr.rel (!%p18_p7) target bundleno = 4 (0x4), region = 91 }
 0x2ed   :  { %673 = vsyncpa [#allocation3], 1 }
 0x2ee   :  { %675 = vsyncpa [#allocation3 + $0x1], 1 }
 0x2ef   :  { %676 = vsyncpa [#allocation4], 1 }
 0x2f0   :  { %678 = vsyncpa [#allocation4 + $0x1], 1 }

</bundles_post_ra>
